<compile_context>
chip_gen: v5e
topology: v5e:2x2
jax: 0.10.0
libtpu: 0.0.40
codegen_flags: <defaults>
</compile_context>

<pallas_src>
import functools

import jax
import jax.numpy as jnp
from jax.experimental import pallas as pl
from jax.experimental.pallas import tpu as pltpu


# ----------------------------- kernels --------------------------------------


def _pool_matmul_kernel(x_ref, q_ref, o_ref, *, out_scale):
    # x_ref: (bm, g*s*W)   q_ref: (g*s*W, g*Wo)   o_ref: (bm, g*Wo)
    acc = jnp.dot(x_ref[...], q_ref[...], preferred_element_type=jnp.float32)
    o_ref[...] = (acc * out_scale).astype(o_ref.dtype)


def _learned_psf_kernel(x_ref, q_ref, o_ref, *, channels, th):
    # x_ref: (1, C, Th, s*W)   q_ref: (s*W, Wo)   o_ref: (1, C, Th, Wo)
    sw = x_ref.shape[-1]
    # Batch all channels / strip rows into ONE MXU matmul (M = C*Th).
    # Th is a multiple of 8, so this reshape is layout-compatible (no relayout).
    lhs = x_ref[...].reshape(channels * th, sw)
    conv = jnp.dot(lhs, q_ref[...], preferred_element_type=jnp.float32)   # (C*Th, Wo)
    wo = conv.shape[-1]
    conv = conv.reshape(channels, th, wo)                                 # (C, Th, Wo)

    # Channel softmax: two-pass reduction over the leading (untiled) axis.
    # Pure VPU adds/maxes + EUP exp; only one strip's intermediates live.
    m = jnp.max(conv, axis=0, keepdims=True)
    e = jnp.exp(conv - m)
    den = jnp.sum(e, axis=0, keepdims=True)
    inv = pl.reciprocal(den, approx=True)        # EUP slot, essentially free
    o_ref[0] = (e * inv).astype(o_ref.dtype)


# ----------------------------- helpers ---------------------------------------


def _pick_group(m_total, wo, *, target_lanes=128, max_lanes=512):
    """Smallest divisor g of m_total with g*wo >= target_lanes (lane-dense
    output stores), capped so the matmul's FLOP redundancy stays bounded."""
    best = 1
    for g in range(1, m_total + 1):
        if m_total % g:
            continue
        if g * wo > max_lanes:
            break
        best = g
        if g * wo >= target_lanes:
            break
    return best


def _pick_block_rows(total, row_bytes, *, target_bytes=4 << 20, sublane=8):
    """Largest divisor of `total` that is a multiple of `sublane` (or == total,
    to satisfy the (8,128) block rule), fits in `target_bytes`, preferring an
    even grid length (keeps both v7x TensorCores busy)."""
    legal = [d for d in range(1, total + 1)
             if total % d == 0 and (d % sublane == 0 or d == total)]
    fit = [d for d in legal if d * row_bytes <= target_bytes]
    if not fit:
        return legal[0]
    even = [d for d in fit if (total // d) % 2 == 0]
    return max(even) if even else max(fit)


def _vmem_limit(*block_bytes):
    """Scoped VMEM budget: 2 buffers per block + slack, clamped to sane bounds."""
    need = 2 * sum(int(b) for b in block_bytes) + (1 << 20)
    return int(min(max(need, 16 << 20), 64 << 20))


# ----------------------------- forward ---------------------------------------


def psf_forward(x, *, scale, weight=None, if_learn=False):
    """PSF forward.

    x:      (N, C, H, W)
    scale:  pooling / conv stride (static Python int)
    weight: (scale, scale) conv kernel (only used when if_learn=True)
    returns (N, C, H//scale, W//scale)
    """
    N, C, H, W = x.shape
    s = int(scale)
    Ho, Wo = H // s, W // s
    if H != Ho * s or W != Wo * s:
        # Floor semantics of stride-s pooling / conv with no padding.
        x = x[:, :, : Ho * s, : Wo * s]
        H, W = Ho * s, Wo * s
    dtype = x.dtype
    itemsize = jnp.dtype(dtype).itemsize

    # Column-selection / weight matrix for one pooling-row patch, shape (s*W, Wo):
    #   base[p*W + w, ow] = [w // s == ow] * (weight[p, w % s] if learned else 1)
    w_idx = jnp.arange(W)
    sel = (w_idx[:, None] // s == jnp.arange(Wo)[None, :]).astype(jnp.float32)  # (W, Wo)
    if if_learn:
        assert weight is not None, "if_learn=True requires the (scale, scale) conv weight"
        w2 = jnp.asarray(weight, jnp.float32).reshape(s, s)
        base = sel[None] * w2[:, (w_idx % s)][:, :, None]            # (s, W, Wo)
    else:
        base = jnp.broadcast_to(sel[None], (s, W, Wo))
    base = base.reshape(s * W, Wo).astype(dtype)

    if not if_learn:
        # -------- avg-pool path: one lane-dense matmul per grid step ---------
        m_total = N * C * Ho                       # one matrix row per output row
        g = _pick_group(m_total, Wo)               # rows grouped for >=128 lanes
        mg = m_total // g
        k = g * s * W
        n_out = g * Wo

        # Free reshape only (contiguous regrouping of NCHW) — no HBM transpose.
        x_g = x.reshape(mg, k)
        # Block-diagonal selection matrix, VMEM-resident across the grid.
        q = jnp.kron(jnp.eye(g, dtype=dtype), base)                 # (k, n_out)

        bm = _pick_block_rows(mg, k * itemsize)
        grid = (mg // bm,)
        in_b, out_b, q_b = bm * k * itemsize, bm * n_out * itemsize, k * n_out * itemsize

        cost = pl.CostEstimate(
            flops=2 * mg * k * n_out,
            transcendentals=0,
            bytes_accessed=itemsize * (mg * k + mg * n_out) + q_b,
        )
        out_g = pl.pallas_call(
            functools.partial(_pool_matmul_kernel, out_scale=1.0 / (s * s)),
            out_shape=jax.ShapeDtypeStruct((mg, n_out), dtype),
            grid_spec=pltpu.PrefetchScalarGridSpec(
                num_scalar_prefetch=0,
                grid=grid,
                in_specs=[
                    pl.BlockSpec((bm, k), lambda i: (i, 0)),
                    pl.BlockSpec((k, n_out), lambda i: (0, 0)),
                ],
                out_specs=pl.BlockSpec((bm, n_out), lambda i: (i, 0)),
            ),
            compiler_params=pltpu.CompilerParams(
                dimension_semantics=("parallel",),
                vmem_limit_bytes=_vmem_limit(in_b, out_b, q_b),
            ),
            cost_estimate=cost,
        )(x_g, q)
        return out_g.reshape(N, C, Ho, Wo)

    # -------- learned path: strided conv (batched matmul) + channel softmax ---
    # Free view: last dim = one pooling-row patch (s input rows), lane width s*W.
    xv = x.reshape(N, C, Ho, s * W)
    th = _pick_block_rows(Ho, C * s * W * itemsize)    # output-row strip height
    grid = (N, Ho // th)
    in_b = C * th * s * W * itemsize
    out_b = C * th * Wo * itemsize
    q_b = s * W * Wo * itemsize
    # NOTE: output lane width is Wo (<128 for small images -> masked stores),
    # but the output is only 1/s^2 of the HBM traffic; input & matmul are dense.

    cost = pl.CostEstimate(
        flops=2 * N * C * Ho * (s * W) * Wo + 6 * N * C * Ho * Wo,
        transcendentals=N * C * Ho * Wo,
        bytes_accessed=itemsize * (N * C * H * W + N * C * Ho * Wo) + q_b,
    )
    out = pl.pallas_call(
        functools.partial(_learned_psf_kernel, channels=C, th=th),
        out_shape=jax.ShapeDtypeStruct((N, C, Ho, Wo), dtype),
        grid_spec=pltpu.PrefetchScalarGridSpec(
            num_scalar_prefetch=0,
            grid=grid,
            in_specs=[
                pl.BlockSpec((1, C, th, s * W), lambda n, t: (n, 0, t, 0)),
                pl.BlockSpec((s * W, Wo), lambda n, t: (0, 0)),
            ],
            out_specs=pl.BlockSpec((1, C, th, Wo), lambda n, t: (n, 0, t, 0)),
        ),
        compiler_params=pltpu.CompilerParams(
            dimension_semantics=("parallel", "parallel"),
            vmem_limit_bytes=_vmem_limit(in_b, out_b, q_b),
        ),
        cost_estimate=cost,
    )(xv, base)
    return out


if __name__ == "__main__":
    # Small shapes consistent with the module's forward.
    N, C, H, W = 2, 4, 16, 16
    scale = 2
    Ho, Wo = H // scale, W // scale

    key = jax.random.PRNGKey(0)
    kx, kw = jax.random.split(key)
    x = jax.random.normal(kx, (N, C, H, W), dtype=jnp.float32)
    conv_w = jax.random.normal(kw, (scale, scale), dtype=jnp.float32) * 0.5

    # --- default path: if_learn=False -> avg_pool2d(kernel=stride=scale) ---
    fwd = jax.jit(functools.partial(psf_forward, scale=scale, if_learn=False))
    out = jax.block_until_ready(fwd(x))
    ref = x.reshape(N, C, Ho, scale, Wo, scale).mean(axis=(3, 5))
    assert out.shape == (N, C, Ho, Wo), out.shape
    assert jnp.allclose(out, ref, atol=1e-5, rtol=1e-5), float(
        jnp.max(jnp.abs(out - ref))
    )

    # --- learned path: per-channel shared conv + softmax over channels ---
    fwd_l = jax.jit(functools.partial(psf_forward, scale=scale, if_learn=True))
    out_l = jax.block_until_ready(fwd_l(x, weight=conv_w))
    patches = x.reshape(N, C, Ho, scale, Wo, scale)
    conv_ref = jnp.einsum("ncisjt,st->ncij", patches, conv_w)
    ref_l = jax.nn.softmax(conv_ref, axis=1)
    assert out_l.shape == (N, C, Ho, Wo), out_l.shape
    # Slightly looser tolerance: softmax normalizer uses pl.reciprocal(approx=True).
    assert jnp.allclose(out_l, ref_l, atol=2e-3, rtol=2e-3), float(
        jnp.max(jnp.abs(out_l - ref_l))
    )

    print("KERNEL_OK")
</pallas_src>

<mosaic_0001>
module attributes {stable_mosaic.version = 11 : i64} {
  func.func @_pool_matmul_kernel(%arg0: i32, %arg1: memref<4x512xf32, #tpu.memory_space<vmem>>, %arg2: memref<512x128xf32, #tpu.memory_space<vmem>>, %arg3: memref<4x128xf32, #tpu.memory_space<vmem>>) attributes {dimension_semantics = [#tpu.dimension_semantics<parallel>], iteration_bounds = array<i64: 1>, scalar_prefetch = 0 : i64, scratch_operands = 0 : i64, tpu.core_type = #tpu.core_type<tc>, window_params = [{transform_indices = @transform_0, window_bounds = array<i64: 4, 512>}, {pipeline_mode = #tpu.pipeline_mode<synchronous>, transform_indices = @transform_1, window_bounds = array<i64: 512, 128>}, {transform_indices = @transform_2, window_bounds = array<i64: 4, 128>}]} {
    %c0 = arith.constant 0 : index
    %c0_0 = arith.constant 0 : index
    %0 = vector.load %arg1[%c0, %c0_0] : memref<4x512xf32, #tpu.memory_space<vmem>>, vector<4x512xf32>
    %c0_1 = arith.constant 0 : index
    %c0_2 = arith.constant 0 : index
    %1 = vector.load %arg2[%c0_1, %c0_2] : memref<512x128xf32, #tpu.memory_space<vmem>>, vector<512x128xf32>
    %cst = arith.constant dense<0.000000e+00> : vector<4x128xf32>
    %2 = tpu.matmul %0, %1, %cst {dimension_numbers = #tpu.dot_dimension_numbers<[1], [0], [0], [1], [0, 0, 1, 1], [], []>} : vector<4x512xf32>, vector<512x128xf32>, vector<4x128xf32> -> vector<4x128xf32>
    %cst_3 = arith.constant 2.500000e-01 : f32
    %3 = vector.broadcast %cst_3 : f32 to vector<4x128xf32>
    %4 = arith.mulf %2, %3 : vector<4x128xf32>
    %c0_4 = arith.constant 0 : index
    %c0_5 = arith.constant 0 : index
    %5 = vector.load %arg3[%c0_4, %c0_5] : memref<4x128xf32, #tpu.memory_space<vmem>>, vector<4x128xf32>
    tpu.vector_store %arg3[%c0_4, %c0_5], %4 {strides = array<i32>} : memref<4x128xf32, #tpu.memory_space<vmem>>, vector<4x128xf32>,
    return
  }
  func.func @transform_0(%arg0: i32) -> (i32, i32) {
    %c0_i32 = arith.constant 0 : i32
    %c0_i32_0 = arith.constant 0 : i32
    return %arg0, %c0_i32 : i32, i32
  }
  func.func @transform_1(%arg0: i32) -> (i32, i32) {
    %c0_i32 = arith.constant 0 : i32
    %c0_i32_0 = arith.constant 0 : i32
    %c0_i32_1 = arith.constant 0 : i32
    return %c0_i32, %c0_i32_0 : i32, i32
  }
  func.func @transform_2(%arg0: i32) -> (i32, i32) {
    %c0_i32 = arith.constant 0 : i32
    %c0_i32_0 = arith.constant 0 : i32
    return %arg0, %c0_i32 : i32, i32
  }
}

</mosaic_0001>

<bundles_post_ra>
// kernel: mul.4
= control target key start
LH: loop header
LB: loop body
LE: loop exit
PB: predicated region body
PF: predicated region fallthrough
CT: control target
= control target key end

     0   :  { %vm36_vm0 = vcmask 1047556   ;;  %vm38_vm1 = vcmask 130048   ;;  %vm48_vm2 = vcmask 261248   ;;  %s99_s0 = inlined_call_operand.vmem [shape: f32[2,16,8], index: 0, kind: input, shape index: {}]   ;;  %s100_s1 = inlined_call_operand.vmem [shape: f32[32,8], index: 1, kind: output, shape index: {}]  }
   0x1   :  { %v50_v0 = vld [vmem:[%s99_s0 + $0xe] sm:$0x3]  ;;  %v51_v1 = vld [vmem:[%s99_s0 + $0xc] sm:$0x3]  ;;  %v52_v2 = vld [vmem:[%s99_s0 + $0xa] sm:$0x3] }
   0x2   :  { %7 = vst [vmem:[#allocation0 + $0x38] sm:$0x3] %v50_v0  ;;  %v53_v3 = vld [vmem:[%s99_s0 + $0x8] sm:$0x3]  ;;  %v54_v4 = vld [vmem:[%s99_s0 + $0x6] sm:$0x3] }
   0x3   :  { %11 = vst [vmem:[#allocation0 + $0x30] sm:$0x3] %v51_v1  ;;  %v55_v5 = vld [vmem:[%s99_s0 + $0x4] sm:$0x3]  ;;  %v56_v6 = vld [vmem:[%s99_s0 + $0x2] sm:$0x3] }
   0x4   :  { %15 = vst [vmem:[#allocation0 + $0x28] sm:$0x3] %v52_v2  ;;  %v32_v7 = vld [vmem:[%s99_s0] sm:$0x3]  ;;  %s58_s0 = smov 16  }
   0x5   :  { %19 = vst [vmem:[#allocation0 + $0x20] sm:$0x3] %v53_v3 }
   0x6   :  { %23 = vst [vmem:[#allocation0 + $0x18] sm:$0x3] %v54_v4 }
   0x7   :  { %27 = vst [vmem:[#allocation0 + $0x10] sm:$0x3] %v55_v5 }
   0x8   :  { %31 = vst [vmem:[#allocation0 + $0x8] sm:$0x3] %v56_v6 }
   0x9   :  { %33 = vst [vmem:[#allocation0] sm:$0x3] %v32_v7 }
   0xc   :  { %v35_v8 = vld [vmem:[#allocation0] ss:$8 sm:$0xf0]   ;;  %v43_v9 = vld [vmem:[#allocation0 + $0x1] ss:$8 sm:$0xf0]  }
  0x10   :  { %v34_v10 = vld [vmem:[#allocation0] ss:$8 sm:$0xf]   ;;  %v41_v11 = vld [vmem:[#allocation0 + $0x1] ss:$8 sm:$0xf]  }
  0x11   :  { %v37_v12 = vsel %vm36_vm0, %v35_v8, %v34_v10  ;;  %v45_v13 = vsel %vm36_vm0, %v43_v9, %v41_v11 }
  0x12   :  { %46 = vrot.lane.b32.xlu0 %v45_v13, %s58_s0  ;;  %39 = vst.msk [vmem:[%s100_s1] sm:$0xff] %vm38_vm1, %v37_v12  }
  0x84   :  { %v47_v14 = vpop.permute.xlu0 %46  }
  0x85   :  { %49 = vst.msk [vmem:[%s100_s1] sm:$0xff] %vm48_vm2, %v47_v14  }

// kernel: psf_forward.1
= control target key start
LH: loop header
LB: loop body
LE: loop exit
PB: predicated region body
PF: predicated region fallthrough
CT: control target
= control target key end

     0   :  { %s392_s1 = inlined_call_operand.vmem [shape: f32[512,128], index: 1, kind: input, shape index: {}]   ;;  %s393_s0 = inlined_call_operand.vmem [shape: f32[4,512], index: 0, kind: input, shape index: {}]   ;;  %s394_s2 = inlined_call_operand.vmem [shape: f32[4,128], index: 2, kind: output, shape index: {}]  }
   0x1   :  { %v60_v0 = vld [vmem:[%s392_s1 + $0x178] sm:$0xff]  ;;  %v59_v1 = vld [vmem:[%s392_s1 + $0x170] sm:$0xff]  ;;  %v58_v5 = vld [vmem:[%s392_s1 + $0x168] sm:$0xff] }
   0x2   :  { %v76_v2 = vld [vmem:[%s392_s1 + $0x1f8] sm:$0xff]  ;;  %130 = vmatpush.msra.mxu2 %v60_v0  ;;  %v75_v6 = vld [vmem:[%s392_s1 + $0x1f0] sm:$0xff]  ;;  %v74_v9 = vld [vmem:[%s392_s1 + $0x1e8] sm:$0xff] }
   0x3   :  { %150 = vmatpush.msra.mxu3 %v76_v2  ;;  %v28_v3 = vld [vmem:[%s392_s1 + $0x78] sm:$0xff]  ;;  %v27_v7 = vld [vmem:[%s392_s1 + $0x70] sm:$0xff]  ;;  %v26_v10 = vld [vmem:[%s392_s1 + $0x68] sm:$0xff] }
   0x4   :  { %v44_v4 = vld [vmem:[%s392_s1 + $0xf8] sm:$0xff]  ;;  %90 = vmatpush.msra.mxu0 %v28_v3  ;;  %v43_v8 = vld [vmem:[%s392_s1 + $0xf0] sm:$0xff]  ;;  %131 = vmatpush.msra.mxu2 %v59_v1  ;;  %v57_v11 = vld [vmem:[%s392_s1 + $0x160] sm:$0xff] }
   0x5   :  { %110 = vmatpush.msra.mxu1 %v44_v4  ;;  %151 = vmatpush.msra.mxu3 %v75_v6  ;;  %v42_v12 = vld [vmem:[%s392_s1 + $0xe8] sm:$0xff]  ;;  %v73_v13 = vld [vmem:[%s392_s1 + $0x1e0] sm:$0xff]  ;;  %v56_v16 = vld [vmem:[%s392_s1 + $0x158] sm:$0xff] }
   0x6   :  { %91 = vmatpush.msra.mxu0 %v27_v7  ;;  %132 = vmatpush.msra.mxu2 %v58_v5  ;;  %v25_v14 = vld [vmem:[%s392_s1 + $0x60] sm:$0xff]  ;;  %v72_v17 = vld [vmem:[%s392_s1 + $0x1d8] sm:$0xff]  ;;  %v55_v20 = vld [vmem:[%s392_s1 + $0x150] sm:$0xff] }
   0x7   :  { %111 = vmatpush.msra.mxu1 %v43_v8  ;;  %152 = vmatpush.msra.mxu3 %v74_v9  ;;  %v41_v15 = vld [vmem:[%s392_s1 + $0xe0] sm:$0xff]  ;;  %v24_v18 = vld [vmem:[%s392_s1 + $0x58] sm:$0xff]  ;;  %v71_v21 = vld [vmem:[%s392_s1 + $0x1d0] sm:$0xff] }
   0x8   :  { %92 = vmatpush.msra.mxu0 %v26_v10  ;;  %133 = vmatpush.msra.mxu2 %v57_v11  ;;  %v40_v19 = vld [vmem:[%s392_s1 + $0xd8] sm:$0xff]  ;;  %v23_v22 = vld [vmem:[%s392_s1 + $0x50] sm:$0xff]  ;;  %v54_v24 = vld [vmem:[%s392_s1 + $0x148] sm:$0xff] }
   0x9   :  { %112 = vmatpush.msra.mxu1 %v42_v12  ;;  %153 = vmatpush.msra.mxu3 %v73_v13  ;;  %v39_v23 = vld [vmem:[%s392_s1 + $0xd0] sm:$0xff]  ;;  %v70_v25 = vld [vmem:[%s392_s1 + $0x1c8] sm:$0xff]  ;;  %v53_v28 = vld [vmem:[%s392_s1 + $0x140] sm:$0xff] }
   0xa   :  { %93 = vmatpush.msra.mxu0 %v25_v14  ;;  %134 = vmatpush.msra.mxu2 %v56_v16  ;;  %v22_v26 = vld [vmem:[%s392_s1 + $0x48] sm:$0xff]  ;;  %v69_v29 = vld [vmem:[%s392_s1 + $0x1c0] sm:$0xff]  ;;  %v52_v32 = vld [vmem:[%s392_s1 + $0x138] sm:$0xff] }
   0xb   :  { %113 = vmatpush.msra.mxu1 %v41_v15  ;;  %154 = vmatpush.msra.mxu3 %v72_v17  ;;  %v38_v27 = vld [vmem:[%s392_s1 + $0xc8] sm:$0xff]  ;;  %v21_v30 = vld [vmem:[%s392_s1 + $0x40] sm:$0xff]  ;;  %v68_v33 = vld [vmem:[%s392_s1 + $0x1b8] sm:$0xff] }
   0xc   :  { %94 = vmatpush.msra.mxu0 %v24_v18  ;;  %135 = vmatpush.msra.mxu2 %v55_v20  ;;  %v37_v31 = vld [vmem:[%s392_s1 + $0xc0] sm:$0xff]  ;;  %v20_v34 = vld [vmem:[%s392_s1 + $0x38] sm:$0xff]  ;;  %v51_v36 = vld [vmem:[%s392_s1 + $0x130] sm:$0xff] }
   0xd   :  { %114 = vmatpush.msra.mxu1 %v40_v19  ;;  %155 = vmatpush.msra.mxu3 %v71_v21  ;;  %v36_v35 = vld [vmem:[%s392_s1 + $0xb8] sm:$0xff]  ;;  %v67_v37 = vld [vmem:[%s392_s1 + $0x1b0] sm:$0xff]  ;;  %v50_v40 = vld [vmem:[%s392_s1 + $0x128] sm:$0xff] }
   0xe   :  { %95 = vmatpush.msra.mxu0 %v23_v22  ;;  %136 = vmatpush.msra.mxu2 %v54_v24  ;;  %v19_v38 = vld [vmem:[%s392_s1 + $0x30] sm:$0xff]  ;;  %v66_v41 = vld [vmem:[%s392_s1 + $0x1a8] sm:$0xff]  ;;  %v49_v45 = vld [vmem:[%s392_s1 + $0x120] sm:$0xff] }
   0xf   :  { %115 = vmatpush.msra.mxu1 %v39_v23  ;;  %156 = vmatpush.msra.mxu3 %v70_v25  ;;  %v35_v39 = vld [vmem:[%s392_s1 + $0xb0] sm:$0xff]  ;;  %v18_v42 = vld [vmem:[%s392_s1 + $0x28] sm:$0xff]  ;;  %v65_v46 = vld [vmem:[%s392_s1 + $0x1a0] sm:$0xff] }
  0x10   :  { %96 = vmatpush.msra.mxu0 %v22_v26  ;;  %137 = vmatpush.msra.mxu2 %v53_v28  ;;  %v34_v43 = vld [vmem:[%s392_s1 + $0xa8] sm:$0xff]  ;;  %v17_v47 = vld [vmem:[%s392_s1 + $0x20] sm:$0xff]  ;;  %v48_v50 = vld [vmem:[%s392_s1 + $0x118] sm:$0xff] }
  0x11   :  { %116 = vmatpush.msra.mxu1 %v38_v27  ;;  %157 = vmatpush.msra.mxu3 %v69_v29  ;;  %v12_v44 = vld [vmem:[%s393_s0 + $0x8] sm:$0xff]  ;;  %v33_v48 = vld [vmem:[%s392_s1 + $0xa0] sm:$0xff]  ;;  %v64_v51 = vld [vmem:[%s392_s1 + $0x198] sm:$0xff] }
  0x12   :  { %97 = vmatpush.msra.mxu0 %v21_v30  ;;  %138 = vmatpush.msra.mxu2 %v52_v32  ;;  %81 = vst [vmem:[#allocation1 + $0x10] ss:$2 sm:$0xff] %v12_v44  ;;  %v11_v49 = vld [vmem:[%s393_s0] sm:$0xff]  ;;  %v16_v52 = vld [vmem:[%s392_s1 + $0x18] sm:$0xff]  ;;  %v47_v54 = vld [vmem:[%s392_s1 + $0x110] sm:$0xff] }
  0x13   :  { %117 = vmatpush.msra.mxu1 %v37_v31  ;;  %158 = vmatpush.msra.mxu3 %v68_v33  ;;  %79 = vst [vmem:[#allocation1] ss:$2 sm:$0xff] %v11_v49  ;;  %v32_v53 = vld [vmem:[%s392_s1 + $0x98] sm:$0xff]  ;;  %v63_v55 = vld [vmem:[%s392_s1 + $0x190] sm:$0xff]  ;;  %v46_v58 = vld [vmem:[%s392_s1 + $0x108] sm:$0xff] }
  0x14   :  { %98 = vmatpush.msra.mxu0 %v20_v34  ;;  %139 = vmatpush.msra.mxu2 %v51_v36  ;;  %v15_v56 = vld [vmem:[%s392_s1 + $0x10] sm:$0xff]  ;;  %v62_v59 = vld [vmem:[%s392_s1 + $0x188] sm:$0xff]  ;;  %v45_v62 = vld [vmem:[%s392_s1 + $0x100] sm:$0xff] }
  0x15   :  { %118 = vmatpush.msra.mxu1 %v36_v35  ;;  %159 = vmatpush.msra.mxu3 %v67_v37  ;;  %v31_v57 = vld [vmem:[%s392_s1 + $0x90] sm:$0xff]  ;;  %v14_v60 = vld [vmem:[%s392_s1 + $0x8] sm:$0xff]  ;;  %v61_v63 = vld [vmem:[%s392_s1 + $0x180] sm:$0xff] }
  0x16   :  { %99 = vmatpush.msra.mxu0 %v19_v38  ;;  %140 = vmatpush.msra.mxu2 %v50_v40  ;;  %v30_v61 = vld [vmem:[%s392_s1 + $0x88] sm:$0xff]  ;;  %v13_v2 = vld [vmem:[%s392_s1] sm:$0xff] }
  0x17   :  { %119 = vmatpush.msra.mxu1 %v35_v39  ;;  %160 = vmatpush.msra.mxu3 %v66_v41  ;;  %v29_v3 = vld [vmem:[%s392_s1 + $0x80] sm:$0xff] }
  0x18   :  { %100 = vmatpush.msra.mxu0 %v18_v42  ;;  %141 = vmatpush.msra.mxu2 %v49_v45 }
  0x19   :  { %120 = vmatpush.msra.mxu1 %v34_v43  ;;  %161 = vmatpush.msra.mxu3 %v65_v46  ;;  %v84_v0 = vld.sshfl [vmem:[#allocation1 + $0x10] sm:$0xff pattern:$0x75316420]  ;;  %v85_v1 = vld.sshfl [vmem:[#allocation1 + $0x18] sm:$0xff pattern:$0x75316420] }
  0x1a   :  { %101 = vmatpush.msra.mxu0 %v17_v47  ;;  %142 = vmatpush.msra.mxu2 %v48_v50  ;;  %v82_v4 = vld.sshfl [vmem:[#allocation1] sm:$0xff pattern:$0x75316420]  ;;  %v83_v5 = vld.sshfl [vmem:[#allocation1 + $0x8] sm:$0xff pattern:$0x75316420] }
  0x1b   :  { %121 = vmatpush.msra.mxu1 %v33_v48  ;;  %162 = vmatpush.msra.mxu3 %v64_v51 }
  0x1c   :  { %102 = vmatpush.msra.mxu0 %v16_v52  ;;  %143 = vmatpush.msra.mxu2 %v47_v54 }
  0x1d   :  { %122 = vmatpush.msra.mxu1 %v32_v53  ;;  %163 = vmatpush.msra.mxu3 %v63_v55 }
  0x1e   :  { %103 = vmatpush.msra.mxu0 %v15_v56  ;;  %144 = vmatpush.msra.mxu2 %v46_v58 }
  0x1f   :  { %123 = vmatpush.msra.mxu1 %v31_v57  ;;  %164 = vmatpush.msra.mxu3 %v62_v59 }
  0x20   :  { %104 = vmatpush.msra.mxu0 %v14_v60  ;;  %145 = vmatpush.msra.mxu2 %v45_v62 }
  0x21   :  { %124 = vmatpush.msra.mxu1 %v30_v61  ;;  %165 = vmatpush.msra.mxu3 %v61_v63 }
  0x22   :  { %146 = vmatmul.f32.vlgmr.msra.gmra.mxu2 %v84_v0  ;;  %166 = vmatmul.f32.vlgmr.msra.gmra.mxu3 %v85_v1 }
  0x23   :  { %105 = vmatpush.msra.mxu0 %v13_v2  ;;  %125 = vmatpush.msra.mxu1 %v29_v3 }
  0x24   :  { %106 = vmatmul.f32.vlgmr.msra.gmra.mxu0 %v82_v4  ;;  %126 = vmatmul.f32.vlgmr.msra.gmra.mxu1 %v83_v5 }
  0xa1   :  { %v107_v6 = vpop.f32.mrf.mxu0  ;;  %v127_v7 = vpop.f32.mrf.mxu1 }
  0xa2   :  { %v128_v8 = vadd.f32 %v127_v7, %v107_v6 }
  0xa5   :  { %v147_v9 = vpop.f32.mrf.mxu2  ;;  %v167_v10 = vpop.f32.mrf.mxu3 }
  0xa6   :  { %v148_v11 = vadd.f32 %v147_v9, %v128_v8 }
  0xa8   :  { %v168_v12 = vadd.f32 %v167_v10, %v148_v11 }
  0xaa   :  { %v170_v13 = vmul.f32 0.25, %v168_v12 }
  0xac   :  { %171 = vst [vmem:[%s394_s2] sm:$0xf] %v170_v13 }

</bundles_post_ra>
